<compile_context>
chip_gen: v7x
topology: tpu7x:2x2x1
jax: 0.10.0
libtpu: 0.0.40
codegen_flags: <defaults>
</compile_context>

<pallas_src>
import jax
import jax.numpy as jnp
from jax.experimental import pallas as pl
from jax.experimental.pallas import tpu as pltpu

_LANES = 128
_SUBLANES = 8
_SUB_ROWS = 64                       # inner fold chunk (rows); multiple of 8
_MAX_TILE_ROWS = 4096                # 4096 * 128 * 4B = 2 MiB per input block
_BLOCK_BUDGET_BYTES = 2 * 1024 * 1024  # per-input per-block budget (f32)


def _cdiv(a: int, b: int) -> int:
    return -(-a // b)


def _choose_tile_rows(rows: int, cols: int) -> int:
    """Pick a row-tile: big enough to amortize per-step overhead, small enough
    to double-buffer in VMEM, and small enough that mid-sized inputs still get
    >= 2 grid blocks (megacore)."""
    by_budget = max(_SUBLANES, _BLOCK_BUDGET_BYTES // (4 * cols))
    by_split = max(_SUBLANES, _cdiv(rows, 2))   # aim for >= 2 blocks
    t = min(_MAX_TILE_ROWS, by_budget, by_split)
    if t >= _SUB_ROWS:
        t = (t // _SUB_ROWS) * _SUB_ROWS        # divisible by the sub-chunk
    else:
        t = max(_SUBLANES, (t // _SUBLANES) * _SUBLANES)
    return t


def _make_kld_kernel(rows: int, cols: int, tile_rows: int, sub_rows: int):
    """Kernel producing an (8, cols) per-block partial sum of exp(v)+m^2-v."""
    num_blocks = _cdiv(rows, tile_rows)
    rem_rows = rows - (num_blocks - 1) * tile_rows   # valid rows in last block
    need_mask = rem_rows != tile_rows
    nsub = tile_rows // sub_rows
    groups = sub_rows // _SUBLANES
    unroll = nsub <= 8

    def _fold(chunk):
        # (sub_rows, cols) -> (8, cols): add aligned 8-row groups (VPU only).
        acc = chunk[:_SUBLANES, :]
        for g in range(1, groups):
            acc = acc + chunk[g * _SUBLANES:(g + 1) * _SUBLANES, :]
        return acc

    def _sub_contrib(m_ref, v_ref, s, masked: bool):
        if nsub == 1:
            r0 = 0
        else:
            r0 = pl.multiple_of(s * sub_rows, sub_rows)
        m = m_ref[pl.ds(r0, sub_rows), :].astype(jnp.float32)
        v = v_ref[pl.ds(r0, sub_rows), :].astype(jnp.float32)
        c = jnp.exp(v) + m * m - v          # "-1.0" hoisted to the wrapper
        if masked:
            # OOB rows of a partial edge block hold unspecified data; select
            # (not multiply) so Inf/NaN in the dead branch is discarded.
            row = r0 + jax.lax.broadcasted_iota(jnp.int32, c.shape, 0)
            c = jnp.where(row < rem_rows, c, 0.0)
        return c

    def kernel(m_ref, v_ref, out_ref):
        zero = jnp.zeros((_SUBLANES, cols), jnp.float32)

        def run(masked: bool):
            def body(s, acc):
                return acc + _fold(_sub_contrib(m_ref, v_ref, s, masked))
            return jax.lax.fori_loop(0, nsub, body, zero, unroll=unroll)

        if not need_mask:
            out_ref[...] = run(False)
        elif num_blocks == 1:
            out_ref[...] = run(True)
        else:
            is_last = pl.program_id(0) == num_blocks - 1

            @pl.when(jnp.logical_not(is_last))
            def _():
                out_ref[...] = run(False)      # full blocks: no mask cost

            @pl.when(is_last)
            def _():
                out_ref[...] = run(True)       # only the last block masks

    return kernel


@jax.jit
def kld(mean: jax.Array, var: jax.Array) -> jax.Array:
    """Computes 0.5 * sum(exp(var) + mean^2 - 1 - var) with a Pallas kernel."""
    assert mean.shape == var.shape, "mean and var must have the same shape"

    n = mean.size
    if n == 0:
        return jnp.float32(0.0)

    # ---- choose a copy-free 2-D view of the inputs -------------------------
    if n % _LANES == 0:
        rows, cols = n // _LANES, _LANES                  # fully lane-dense
        m2d = mean.reshape(rows, cols)
        v2d = var.reshape(rows, cols)
        n_sub = n
    elif mean.ndim >= 1 and (mean.shape[-1] * 4 * _SUBLANES) <= _BLOCK_BUDGET_BYTES:
        cols = mean.shape[-1]                             # full-width lane dim
        rows = n // cols
        m2d = mean.reshape(rows, cols)
        v2d = var.reshape(rows, cols)
        n_sub = n
    else:
        # TODO(synk): rare fallback (0-d input or a huge non-128-multiple last
        # dim): pad the flat view to a lane multiple (one extra HBM copy).
        pad = (-n) % _LANES
        m_flat = jnp.pad(jnp.ravel(mean), (0, pad))
        v_flat = jnp.pad(jnp.ravel(var), (0, pad))
        rows, cols = (n + pad) // _LANES, _LANES
        m2d = m_flat.reshape(rows, cols)
        v2d = v_flat.reshape(rows, cols)
        n_sub = n + pad        # each zero-pad element contributes exp(0)=1

    tile_rows = _choose_tile_rows(rows, cols)
    sub_rows = min(_SUB_ROWS, tile_rows)
    num_blocks = _cdiv(rows, tile_rows)

    partials = pl.pallas_call(
        _make_kld_kernel(rows, cols, tile_rows, sub_rows),
        out_shape=jax.ShapeDtypeStruct((num_blocks * _SUBLANES, cols), jnp.float32),
        grid=(num_blocks,),
        in_specs=[
            pl.BlockSpec((tile_rows, cols), lambda i: (i, 0)),
            pl.BlockSpec((tile_rows, cols), lambda i: (i, 0)),
        ],
        out_specs=pl.BlockSpec((_SUBLANES, cols), lambda i: (i, 0)),
        compiler_params=pltpu.CompilerParams(
            dimension_semantics=("parallel",),
        ),
    )(m2d, v2d)

    # "-1.0" per element was hoisted out of the kernel: subtract n here.
    return 0.5 * (jnp.sum(partials) - jnp.float32(n_sub))


def kld_ref(mean, var):
    m = mean.astype(jnp.float32)
    v = var.astype(jnp.float32)
    return 0.5 * jnp.sum(jnp.exp(v) + m * m - 1.0 - v)


if __name__ == "__main__":
    key = jax.random.PRNGKey(0)
    k1, k2, k3, k4, k5, k6 = jax.random.split(key, 6)

    # 1) Small VAE-latent-like shape: batch=8, latent_dim=300.
    #    n % 128 != 0 -> (rows, cols)=(8, 300) view, single full block.
    mean1 = jax.random.normal(k1, (8, 300), dtype=jnp.float32)
    var1 = jax.random.normal(k2, (8, 300), dtype=jnp.float32) * 0.5
    out1 = kld(mean1, var1)
    jax.block_until_ready(out1)
    exp1 = kld_ref(mean1, var1)
    assert jnp.allclose(out1, exp1, rtol=1e-5, atol=1e-3), (out1, exp1)

    # 2) Lane-dense path with multi-block grid, multi-sub-chunk fold and a
    #    masked partial last block (n % 128 == 0, rows=1040, tile=512).
    mean2 = jax.random.normal(k3, (130, 1024), dtype=jnp.float32)
    var2 = jax.random.normal(k4, (130, 1024), dtype=jnp.float32) * 0.5
    out2 = kld(mean2, var2)
    jax.block_until_ready(out2)
    exp2 = kld_ref(mean2, var2)
    assert jnp.allclose(out2, exp2, rtol=2e-5, atol=1e-2), (out2, exp2)

    # 3) Non-128-multiple total size: copy-free (130, 1030) view, 3 blocks,
    #    mask gated to the last block only.
    mean3 = jax.random.normal(k5, (130, 1030), dtype=jnp.float32)
    var3 = jax.random.normal(k6, (130, 1030), dtype=jnp.float32) * 0.5
    out3 = kld(mean3, var3)
    jax.block_until_ready(out3)
    exp3 = kld_ref(mean3, var3)
    assert jnp.allclose(out3, exp3, rtol=2e-5, atol=1e-2), (out3, exp3)

    print("KERNEL_OK")
</pallas_src>

<mosaic_0001>
module attributes {stable_mosaic.version = 11 : i64} {
  func.func @kernel(%arg0: i32, %arg1: memref<8x300xf32, #tpu.memory_space<vmem>>, %arg2: memref<8x300xf32, #tpu.memory_space<vmem>>, %arg3: memref<8x300xf32, #tpu.memory_space<vmem>>) attributes {dimension_semantics = [#tpu.dimension_semantics<parallel>], iteration_bounds = array<i64: 1>, scalar_prefetch = 0 : i64, scratch_operands = 0 : i64, tpu.core_type = #tpu.core_type<tc>, window_params = [{transform_indices = @transform_0, window_bounds = array<i64: 8, 300>}, {transform_indices = @transform_1, window_bounds = array<i64: 8, 300>}, {transform_indices = @transform_2, window_bounds = array<i64: 8, 300>}]} {
    %cst = arith.constant 0.000000e+00 : f32
    %0 = vector.broadcast %cst : f32 to vector<8x300xf32>
    %c0_i32 = arith.constant 0 : i32
    %c0 = arith.constant 0 : index
    %c0_0 = arith.constant 0 : index
    %1 = vector.load %arg1[%c0, %c0_0] : memref<8x300xf32, #tpu.memory_space<vmem>>, vector<8x300xf32>
    %c0_1 = arith.constant 0 : index
    %c0_2 = arith.constant 0 : index
    %2 = vector.load %arg2[%c0_1, %c0_2] : memref<8x300xf32, #tpu.memory_space<vmem>>, vector<8x300xf32>
    %3 = math.exp %2 : vector<8x300xf32>
    %4 = arith.mulf %1, %1 : vector<8x300xf32>
    %5 = arith.addf %3, %4 : vector<8x300xf32>
    %6 = arith.subf %5, %2 : vector<8x300xf32>
    %7 = arith.addf %0, %6 : vector<8x300xf32>
    %c0_3 = arith.constant 0 : index
    %c0_4 = arith.constant 0 : index
    %8 = vector.load %arg3[%c0_3, %c0_4] : memref<8x300xf32, #tpu.memory_space<vmem>>, vector<8x300xf32>
    tpu.vector_store %arg3[%c0_3, %c0_4], %7 {strides = array<i32>} : memref<8x300xf32, #tpu.memory_space<vmem>>, vector<8x300xf32>,
    return
  }
  func.func @transform_0(%arg0: i32) -> (i32, i32) {
    %c0_i32 = arith.constant 0 : i32
    %c0_i32_0 = arith.constant 0 : i32
    return %arg0, %c0_i32 : i32, i32
  }
  func.func @transform_1(%arg0: i32) -> (i32, i32) {
    %c0_i32 = arith.constant 0 : i32
    %c0_i32_0 = arith.constant 0 : i32
    return %arg0, %c0_i32 : i32, i32
  }
  func.func @transform_2(%arg0: i32) -> (i32, i32) {
    %c0_i32 = arith.constant 0 : i32
    %c0_i32_0 = arith.constant 0 : i32
    return %arg0, %c0_i32 : i32, i32
  }
}

</mosaic_0001>

<bundles_post_ra>
// kernel: kld.1
= control target key start
LH: loop header
LB: loop body
LE: loop exit
PB: predicated region body
PF: predicated region fallthrough
CT: control target
= control target key end

     0   :  { %7 = vsyncpa [#allocation3], 0  ;;  %s175_s0 = inlined_call_operand.hbm [shape: f32[8,300], index: 0, kind: input, shape index: {}]   ;;  %s176_s1 = inlined_call_operand.hbm [shape: f32[8,300], index: 1, kind: input, shape index: {}]   ;;  %s177_s2 = inlined_call_operand.vmem [shape: f32[8,300], index: 2, kind: output, shape index: {}]  }
   0x1   :  { %8 = vsyncpa [#allocation5], 0  ;;  %s125_s9 = smov [#allocation2]   ;;  %s126_s11 = smov [#allocation4]  }
   0x2   :  { %s15_s10 = sshll.u32 %s125_s9, 4  ;;  %s25_s12 = sshll.u32 %s126_s11, 4  ;;  %s16_s10 = int_to_ptr.vmem [resolvable:$true] %s15_s10  ;;  %s26_s12 = int_to_ptr.vmem [resolvable:$true] %s25_s12 }
   0x3   :  { %s77_s15 = scalar_lea.hbm %s175_s0, 384 }
   0x4   :  { %p78_p0 = scmp.ne.s32.totalorder %s175_s0, %s77_s15  ;;  %p81_p1 = scmp.lt.u32.totalorder %s77_s15, %s175_s0 }
   0x6   :  { %p83_p2 = pnand %p81_p1, %p78_p0 }
   0x8   :  { %86 = shalt.err (!%p83_p2)
}
   0x9   :  { %s87_s20 = scalar_lea.vmem %s16_s10, 384  ;;  %p92_p4 = scmp.lt.s32.totalorder %s16_s10, %s16_s10 }
   0xa   :  { %p88_p3 = scmp.ne.s32.totalorder %s16_s10, %s87_s20  ;;  %p93_p5 = scmp.lt.s32.totalorder %s87_s20, %s87_s20 }
   0xc   :  { %p94_p6 = por %p93_p5, %p92_p4 }
   0xe   :  { %p95_p7 = pnand %p94_p6, %p88_p3 }
  0x10   :  { %98 = shalt.err (!%p95_p7)
}
  0x11   :  { %18 = dma.hbm_to_vmem [thread:$0]  %s175_s0, 384, %s16_s10, [#allocation3]  }
  0x12   :  { %s99_s25 = scalar_lea.hbm %s176_s1, 384 }
  0x13   :  { %p100_p8 = scmp.ne.s32.totalorder %s176_s1, %s99_s25  ;;  %p103_p9 = scmp.lt.u32.totalorder %s99_s25, %s176_s1 }
  0x15   :  { %p105_p10 = pnand %p103_p9, %p100_p8 }
  0x17   :  { %108 = shalt.err (!%p105_p10)
}
  0x18   :  { %s109_s30 = scalar_lea.vmem %s26_s12, 384  ;;  %p114_p12 = scmp.lt.s32.totalorder %s26_s12, %s26_s12 }
  0x19   :  { %p110_p11 = scmp.ne.s32.totalorder %s26_s12, %s109_s30  ;;  %p115_p13 = scmp.lt.s32.totalorder %s109_s30, %s109_s30 }
  0x1b   :  { %p116_p0 = por %p115_p13, %p114_p12 }
  0x1d   :  { %p117_p1 = pnand %p116_p0, %p110_p11 }
  0x1f   :  { %120 = shalt.err (!%p117_p1)
}
  0x20   :  { %28 = dma.hbm_to_vmem [thread:$0]  %s176_s1, 384, %s26_s12, [#allocation5]  }
  0x21   :  { %121 = dma.done.wait [#allocation3], 384  }
  0x22   :  { %122 = vsyncadd [#allocation3], 4294966912 }
  0x23   :  { %123 = dma.done.wait [#allocation5], 384  }
  0x24   :  { %124 = vsyncadd [#allocation5], 4294966912  ;;  %v38_v0 = vld [vmem:[#allocation4] sm:$0xff]  ;;  %v39_v2 = vld [vmem:[#allocation4 + $0x8] sm:$0xff]  ;;  %vm61_vm0 = vcmask 359424  }
  0x25   :  { %v41_v1 = vmul.f32 1.442695, %v38_v0  ;;  %v40_v3 = vld [vmem:[#allocation4 + $0x10] sm:$0xff]  ;;  %v43_v4 = vmul.f32 1.442695, %v39_v2  ;;  %v35_v6 = vld [vmem:[#allocation2] sm:$0xff] }
  0x26   :  { %v45_v5 = vmul.f32 1.442695, %v40_v3  ;;  %v36_v7 = vld [vmem:[#allocation2 + $0x8] sm:$0xff]  ;;  %v37_v8 = vld [vmem:[#allocation2 + $0x10] sm:$0xff]  ;;  %v47_v9 = vmul.f32 %v35_v6, %v35_v6 }
  0x27   :  { %71 = vpow2.f32 %v41_v1  ;;  %v48_v10 = vmul.f32 %v36_v7, %v36_v7  ;;  %v49_v11 = vmul.f32 %v37_v8, %v37_v8 }
  0x28   :  { %73 = vpow2.f32 %v43_v4 }
  0x29   :  { %75 = vpow2.f32 %v45_v5 }
  0x31   :  { %v72_v12 = vpop.eup %71 }
  0x32   :  { %v74_v13 = vpop.eup %73  ;;  %v50_v14 = vadd.f32 %v72_v12, %v47_v9 }
  0x33   :  { %v76_v15 = vpop.eup %75  ;;  %v51_v16 = vadd.f32 %v74_v13, %v48_v10 }
  0x34   :  { %v53_v17 = vsub.f32 %v50_v14, %v38_v0  ;;  %v52_v18 = vadd.f32 %v76_v15, %v49_v11 }
  0x35   :  { %v54_v19 = vsub.f32 %v51_v16, %v39_v2 }
  0x36   :  { %59 = vst [vmem:[%s177_s2] sm:$0xff] %v53_v17  ;;  %v55_v20 = vsub.f32 %v52_v18, %v40_v3 }
  0x37   :  { %60 = vst [vmem:[%s177_s2 + $0x8] sm:$0xff] %v54_v19 }
  0x38   :  { %62 = vst.msk [vmem:[%s177_s2 + $0x10] sm:$0xff] %vm61_vm0, %v55_v20 }
  0x39   :  { %67 = vsyncpa [#allocation3], 1 }
  0x3a   :  { %68 = vsyncpa [#allocation5], 1 }

</bundles_post_ra>
